<compile_context>
chip_gen: v6e
topology: v6e:2x2x1
jax: 0.10.0
libtpu: 0.0.40
codegen_flags: <defaults>
</compile_context>

<pallas_src>
import functools

import jax
import jax.numpy as jnp
from jax.experimental import pallas as pl
from jax.experimental.pallas import tpu as pltpu


def _loss_kernel(p_ref, l_ref, o_ref, acc_ref, *,
                 loudness_exponent, inv_n, n_rows, tile_rows):
    i = pl.program_id(0)

    @pl.when(i == 0)
    def _():
        acc_ref[...] = jnp.zeros_like(acc_ref)

    eps = jnp.float32(1e-8)
    p = p_ref[...].astype(jnp.float32)
    l = l_ref[...].astype(jnp.float32)
    # torch.clamp(min=1e-8) is applied under no_grad; forward value identical.
    p = jnp.maximum(jnp.abs(p + eps), eps) ** jnp.float32(loudness_exponent)
    l = jnp.maximum(jnp.abs(l + eps), eps) ** jnp.float32(loudness_exponent)
    d = p - l
    dsq = d * d  # |d|**2 == d*d: avoids abs + float pow (EUP relief)

    if n_rows % tile_rows != 0:
        # Ragged last row-tile: zero contributions from rows past the true end.
        row = jax.lax.broadcasted_iota(jnp.int32, dsq.shape, 0) + i * tile_rows
        dsq = jnp.where(row < n_rows, dsq, jnp.float32(0.0))

    # Vector accumulator: one VPU add per element per step; the full
    # cross-lane/sublane reduction is paid exactly once in the epilogue.
    acc_ref[...] += dsq

    @pl.when(i == pl.num_programs(0) - 1)
    def _():
        total = jnp.sum(acc_ref[...]) * jnp.float32(inv_n)
        o_ref[...] = total.reshape(1, 1)


def compressed_spectral_loss(predictions, labels, loudness_exponent: float = 0.6):
    assert predictions.shape == labels.shape
    B, I, T = predictions.shape
    M = B * I
    n_total = M * T

    # Collapse leading dims only (contiguous reshape, effectively free).
    p2d = predictions.reshape(M, T)
    l2d = labels.reshape(M, T)

    # Row-tile sized for ~2 MiB per input buffer (f32 accounting):
    # 2 inputs x 2 pipeline buffers x 2 MiB + 2 MiB accumulator ~= 10 MiB,
    # within default scoped VMEM on all of v5e / v6e / v7x.
    target_tile_bytes = 2 * 1024 * 1024
    cap = max(8, (target_tile_bytes // (T * 4)) // 8 * 8)
    TM = M if M <= cap else cap  # either full extent or a multiple of 8
    grid = (pl.cdiv(M, TM),)

    kernel = functools.partial(
        _loss_kernel,
        loudness_exponent=float(loudness_exponent),
        inv_n=1.0 / float(n_total),
        n_rows=M,
        tile_rows=TM,
    )

    out = pl.pallas_call(
        kernel,
        out_shape=jax.ShapeDtypeStruct((1, 1), jnp.float32),
        grid_spec=pltpu.PrefetchScalarGridSpec(
            num_scalar_prefetch=0,
            grid=grid,
            in_specs=[
                pl.BlockSpec((TM, T), lambda i: (i, 0)),
                pl.BlockSpec((TM, T), lambda i: (i, 0)),
            ],
            out_specs=pl.BlockSpec((1, 1), lambda i: (0, 0)),
            scratch_shapes=[pltpu.VMEM((TM, T), jnp.float32)],
        ),
        compiler_params=pltpu.CompilerParams(
            dimension_semantics=("arbitrary",),
        ),
    )(p2d, l2d)

    return out[0, 0]


def _reference_loss(predictions, labels, loudness_exponent: float = 0.6):
    eps = 1e-8
    p = jnp.abs(predictions.astype(jnp.float32) + eps)
    l = jnp.abs(labels.astype(jnp.float32) + eps)
    p = jnp.maximum(p, eps) ** loudness_exponent
    l = jnp.maximum(l, eps) ** loudness_exponent
    return jnp.mean(jnp.abs(p - l) ** 2.0)


if __name__ == "__main__":
    key = jax.random.PRNGKey(0)
    k1, k2 = jax.random.split(key)

    n_batches, n_instruments, n_time_frames = 2, 4, 16
    predictions = jax.random.normal(
        k1, (n_batches, n_instruments, n_time_frames), dtype=jnp.float32
    )
    labels = jax.random.normal(
        k2, (n_batches, n_instruments, n_time_frames), dtype=jnp.float32
    )

    loss = compressed_spectral_loss(predictions, labels)
    loss = jax.block_until_ready(loss)

    ref = jax.block_until_ready(_reference_loss(predictions, labels))
    assert jnp.allclose(loss, ref, rtol=1e-5, atol=1e-6), (loss, ref)

    print("KERNEL_OK")
</pallas_src>

<mosaic_0001>
module attributes {stable_mosaic.version = 11 : i64} {
  func.func @_loss_kernel(%arg0: i32, %arg1: memref<8x16xf32, #tpu.memory_space<vmem>>, %arg2: memref<8x16xf32, #tpu.memory_space<vmem>>, %arg3: memref<1x1xf32, #tpu.memory_space<vmem>>, %arg4: memref<8x16xf32, #tpu.memory_space<vmem>>) attributes {dimension_semantics = [#tpu.dimension_semantics<arbitrary>], iteration_bounds = array<i64: 1>, scalar_prefetch = 0 : i64, scratch_operands = 1 : i64, tpu.core_type = #tpu.core_type<tc>, window_params = [{transform_indices = @transform_0, window_bounds = array<i64: 8, 16>}, {transform_indices = @transform_1, window_bounds = array<i64: 8, 16>}, {pipeline_mode = #tpu.pipeline_mode<synchronous>, transform_indices = @transform_2, window_bounds = array<i64: 1, 1>}]} {
    %c0_i32 = arith.constant 0 : i32
    %0 = arith.cmpi eq, %arg0, %c0_i32 : i32
    %1 = arith.extui %0 : i1 to i32
    %c0_i32_0 = arith.constant 0 : i32
    %2 = arith.cmpi ne, %1, %c0_i32_0 : i32
    scf.if %2 {
      %cst_15 = arith.constant 0.000000e+00 : f32
      %27 = vector.broadcast %cst_15 : f32 to vector<8x16xf32>
      %c0_16 = arith.constant 0 : index
      %c0_17 = arith.constant 0 : index
      %28 = vector.load %arg4[%c0_16, %c0_17] : memref<8x16xf32, #tpu.memory_space<vmem>>, vector<8x16xf32>
      tpu.vector_store %arg4[%c0_16, %c0_17], %27 {strides = array<i32>} : memref<8x16xf32, #tpu.memory_space<vmem>>, vector<8x16xf32>,
    } else {
    }
    %c0 = arith.constant 0 : index
    %c0_1 = arith.constant 0 : index
    %3 = vector.load %arg1[%c0, %c0_1] : memref<8x16xf32, #tpu.memory_space<vmem>>, vector<8x16xf32>
    %c0_2 = arith.constant 0 : index
    %c0_3 = arith.constant 0 : index
    %4 = vector.load %arg2[%c0_2, %c0_3] : memref<8x16xf32, #tpu.memory_space<vmem>>, vector<8x16xf32>
    %cst = arith.constant 9.99999993E-9 : f32
    %5 = vector.broadcast %cst : f32 to vector<8x16xf32>
    %6 = arith.addf %3, %5 : vector<8x16xf32>
    %7 = math.absf %6 : vector<8x16xf32>
    %cst_4 = arith.constant 9.99999993E-9 : f32
    %8 = vector.broadcast %cst_4 : f32 to vector<8x16xf32>
    %9 = arith.maximumf %7, %8 : vector<8x16xf32>
    %cst_5 = arith.constant 6.000000e-01 : f32
    %10 = vector.broadcast %cst_5 : f32 to vector<8x16xf32>
    %11 = math.powf %9, %10 : vector<8x16xf32>
    %cst_6 = arith.constant 9.99999993E-9 : f32
    %12 = vector.broadcast %cst_6 : f32 to vector<8x16xf32>
    %13 = arith.addf %4, %12 : vector<8x16xf32>
    %14 = math.absf %13 : vector<8x16xf32>
    %cst_7 = arith.constant 9.99999993E-9 : f32
    %15 = vector.broadcast %cst_7 : f32 to vector<8x16xf32>
    %16 = arith.maximumf %14, %15 : vector<8x16xf32>
    %cst_8 = arith.constant 6.000000e-01 : f32
    %17 = vector.broadcast %cst_8 : f32 to vector<8x16xf32>
    %18 = math.powf %16, %17 : vector<8x16xf32>
    %19 = arith.subf %11, %18 : vector<8x16xf32>
    %20 = arith.mulf %19, %19 : vector<8x16xf32>
    %c0_9 = arith.constant 0 : index
    %c0_10 = arith.constant 0 : index
    %21 = vector.load %arg4[%c0_9, %c0_10] : memref<8x16xf32, #tpu.memory_space<vmem>>, vector<8x16xf32>
    %22 = arith.addf %21, %20 : vector<8x16xf32>
    %c0_11 = arith.constant 0 : index
    %c0_12 = arith.constant 0 : index
    %23 = vector.load %arg4[%c0_11, %c0_12] : memref<8x16xf32, #tpu.memory_space<vmem>>, vector<8x16xf32>
    tpu.vector_store %arg4[%c0_11, %c0_12], %22 {strides = array<i32>} : memref<8x16xf32, #tpu.memory_space<vmem>>, vector<8x16xf32>,
    %c0_i32_13 = arith.constant 0 : i32
    %24 = arith.cmpi eq, %arg0, %c0_i32_13 : i32
    %25 = arith.extui %24 : i1 to i32
    %c0_i32_14 = arith.constant 0 : i32
    %26 = arith.cmpi ne, %25, %c0_i32_14 : i32
    scf.if %26 {
      %c0_15 = arith.constant 0 : index
      %c0_16 = arith.constant 0 : index
      %27 = vector.load %arg4[%c0_15, %c0_16] : memref<8x16xf32, #tpu.memory_space<vmem>>, vector<8x16xf32>
      %28 = vector.shape_cast %27 : vector<8x16xf32> to vector<1x8x16xf32>
      %cst_17 = arith.constant dense<0.000000e+00> : vector<1xf32>
      %29 = vector.multi_reduction <add>, %28, %cst_17 [1, 2] : vector<1x8x16xf32> to vector<1xf32>
      %30 = vector.shape_cast %29 : vector<1xf32> to vector<1x1x1xf32>
      %31 = vector.extract %30[0, 0, 0] : f32 from vector<1x1x1xf32>
      %cst_18 = arith.constant 7.812500e-03 : f32
      %32 = arith.mulf %31, %cst_18 : f32
      %33 = vector.broadcast %32 : f32 to vector<1x1xf32>
      %c0_19 = arith.constant 0 : index
      %c0_20 = arith.constant 0 : index
      %34 = vector.load %arg3[%c0_19, %c0_20] : memref<1x1xf32, #tpu.memory_space<vmem>>, vector<1x1xf32>
      tpu.vector_store %arg3[%c0_19, %c0_20], %33 {strides = array<i32>} : memref<1x1xf32, #tpu.memory_space<vmem>>, vector<1x1xf32>,
    } else {
    }
    return
  }
  func.func @transform_0(%arg0: i32) -> (i32, i32) {
    %c0_i32 = arith.constant 0 : i32
    %c0_i32_0 = arith.constant 0 : i32
    return %arg0, %c0_i32 : i32, i32
  }
  func.func @transform_1(%arg0: i32) -> (i32, i32) {
    %c0_i32 = arith.constant 0 : i32
    %c0_i32_0 = arith.constant 0 : i32
    return %arg0, %c0_i32 : i32, i32
  }
  func.func @transform_2(%arg0: i32) -> (i32, i32) {
    %c0_i32 = arith.constant 0 : i32
    %c0_i32_0 = arith.constant 0 : i32
    %c0_i32_1 = arith.constant 0 : i32
    return %c0_i32, %c0_i32_0 : i32, i32
  }
}

</mosaic_0001>

<bundles_post_ra>
// kernel: tpu_custom_call.1
= control target key start
LH: loop header
LB: loop body
LE: loop exit
PB: predicated region body
PF: predicated region fallthrough
CT: control target
= control target key end

     0   :  { %7 = vsyncpa [#allocation4], 0  ;;  %s255_s0 = inlined_call_operand.hbm [shape: f32[8,16], index: 0, kind: input, shape index: {}]   ;;  %s256_s1 = inlined_call_operand.hbm [shape: f32[8,16], index: 1, kind: input, shape index: {}]   ;;  %s257_s2 = inlined_call_operand.hbm [shape: f32[1,1], index: 2, kind: output, shape index: {}]  }
   0x1   :  { %8 = vsyncpa [#allocation7], 0 }
   0x2   :  { %9 = vsyncpa [#allocation5], 0  ;;  %s224_s9 = smov [#allocation3]   ;;  %s225_s11 = smov [#allocation6]  }
   0x3   :  { %s16_s10 = sshll.u32 %s224_s9, 4  ;;  %s26_s12 = sshll.u32 %s225_s11, 4  ;;  %s17_s10 = int_to_ptr.vmem [resolvable:$true] %s16_s10  ;;  %s27_s12 = int_to_ptr.vmem [resolvable:$true] %s26_s12 }
   0x4   :  { %s166_s13 = scalar_lea.vmem %s17_s10, 128  ;;  %p171_p1 = scmp.lt.s32.totalorder %s17_s10, %s17_s10 }
   0x5   :  { %p167_p0 = scmp.ne.s32.totalorder %s17_s10, %s166_s13  ;;  %p172_p2 = scmp.lt.s32.totalorder %s166_s13, %s166_s13 }
   0x7   :  { %p173_p3 = por %p172_p2, %p171_p1 }
   0x9   :  { %p174_p4 = pnand %p173_p3, %p167_p0 }
   0xb   :  { %177 = shalt.err (!%p174_p4)
}
   0xc   :  { %19 = dma.hbm_to_vmem [thread:$0]  %s255_s0, 128, %s17_s10, [#allocation4]  }
   0xd   :  { %s186_s16 = scalar_lea.vmem %s27_s12, 128  ;;  %p191_p6 = scmp.lt.s32.totalorder %s27_s12, %s27_s12 }
   0xe   :  { %p187_p5 = scmp.ne.s32.totalorder %s27_s12, %s186_s16  ;;  %p192_p7 = scmp.lt.s32.totalorder %s186_s16, %s186_s16 }
  0x10   :  { %p193_p8 = por %p192_p7, %p191_p6 }
  0x12   :  { %p194_p9 = pnand %p193_p8, %p187_p5 }
  0x14   :  { %197 = shalt.err (!%p194_p9)
}
  0x15   :  { %29 = dma.hbm_to_vmem [thread:$0]  %s256_s1, 128, %s27_s12, [#allocation7]  }
  0x16   :  { %218 = dma.done.wait [#allocation4], 128  }
  0x17   :  { %219 = vsyncadd [#allocation4], 4294967168 }
  0x18   :  { %220 = dma.done.wait [#allocation7], 128  }
  0x19   :  { %221 = vsyncadd [#allocation7], 4294967168  ;;  %vm40_vm0 = vcmask 130048   ;;  %v226_v0 = vmov 0.0   ;;  %v42_v1 = vld [vmem:[#allocation3] sm:$0xff]  ;;  %v43_v2 = vld [vmem:[#allocation6] sm:$0xff] }
  0x1a   :  { %41 = vst.msk [vmem:[#allocation2] sm:$0xff] %vm40_vm0, %v226_v0  ;;  %v44_v3 = vadd.f32 1e-08, %v42_v1  ;;  %v48_v4 = vadd.f32 1e-08, %v43_v2  ;;  %s227_s0 = smov [#allocation8]  }
  0x1b   :  { %s82_s1 = sshll.u32 %s227_s0, 4  ;;  %vm74_vm11 = vcmask 0   ;;  %s83_s1 = int_to_ptr.vmem [resolvable:$true] %s82_s1 }
  0x1c   :  { %v45_v5 = vand.u32 2147483647, %v44_v3  ;;  %v49_v6 = vand.u32 2147483647, %v48_v4  ;;  %s198_s21 = scalar_lea.vmem %s83_s1, 16  ;;  %s202_s22 = scalar_lea.vmem %s83_s1, 32 }
  0x1d   :  { %p199_p10 = scmp.ne.s32.totalorder %s83_s1, %s198_s21  ;;  %p203_p11 = scmp.lt.s32.totalorder %s83_s1, %s83_s1 }
  0x1e   :  { %v46_v7 = vmax.f32 %v45_v5, 1e-08  ;;  %v50_v8 = vmax.f32 %v49_v6, 1e-08  ;;  %p204_p12 = scmp.lt.s32.totalorder %s202_s22, %s198_s21 }
  0x20   :  { %v96_v9 = vand.u32 2147483647, %v46_v7  ;;  %v122_v10 = vand.u32 2147483647, %v50_v8  ;;  %vm100_vm1 = vcmp.lt.f32.partialorder %v46_v7, 0  ;;  %vm101_vm2 = vcmp.eq.f32.partialorder %v46_v7, 0  ;;  %p205_p13 = por %p204_p12, %p203_p11 }
  0x21   :  { %vm126_vm3 = vcmp.lt.f32.partialorder %v50_v8, 0  ;;  %vm127_vm5 = vcmp.eq.f32.partialorder %v50_v8, 0  ;;  %vm113_vm6 = vcmp.ne.f32.partialorder %v46_v7, %v46_v7  ;;  %vm102_vm8 = vcmp.eq.f32.partialorder %v46_v7, 1065353216  ;;  %v54_v28 = vld [vmem:[#allocation2] sm:$0xff] }
  0x22   :  { %150 = vlog2.f32 %v96_v9  ;;  %vm105_vm4 = vcmp.eq.f32.partialorder %v96_v9, 2139095040  ;;  %vm131_vm7 = vcmp.eq.f32.partialorder %v122_v10, 2139095040  ;;  %vm139_vm9 = vcmp.ne.f32.partialorder %v50_v8, %v50_v8  ;;  %p206_p0 = pnand %p205_p13, %p199_p10 }
  0x23   :  { %152 = vlog2.f32 %v122_v10  ;;  %vm128_vm10 = vcmp.eq.f32.partialorder %v50_v8, 1065353216 }
  0x2f   :  { %v151_v11 = vpop.eup %150 }
  0x30   :  { %v153_v12 = vpop.eup %152  ;;  %v98_v13 = vmul.f32 0.6, %v151_v11 }
  0x31   :  { %v124_v14 = vmul.f32 0.6, %v153_v12 }
  0x32   :  { %154 = vpow2.f32 %v98_v13 }
  0x33   :  { %156 = vpow2.f32 %v124_v14 }
  0x3f   :  { %v155_v15 = vpop.eup %154 }
  0x40   :  { %v157_v16 = vpop.eup %156  ;;  %v106_v17 = vsel %vm100_vm1, 2143289344, %v155_v15 }
  0x41   :  { %v107_v18 = vsel %vm101_vm2, 0, %v106_v17  ;;  %v132_v19 = vsel %vm126_vm3, 2143289344, %v157_v16 }
  0x42   :  { %v112_v20 = vsel %vm105_vm4, 2139095040, %v107_v18  ;;  %v133_v21 = vsel %vm127_vm5, 0, %v132_v19 }
  0x43   :  { %v116_v22 = vsel %vm113_vm6, 2143289344, %v112_v20  ;;  %v138_v23 = vsel %vm131_vm7, 2139095040, %v133_v21 }
  0x44   :  { %v117_v24 = vsel %vm102_vm8, 1065353216, %v116_v22  ;;  %v142_v25 = vsel %vm139_vm9, 2143289344, %v138_v23 }
  0x45   :  { %v143_v26 = vsel %vm128_vm10, 1065353216, %v142_v25 }
  0x46   :  { %v52_v27 = vsub.f32 %v117_v24, %v143_v26 }
  0x48   :  { %v53_v29 = vmul.f32 %v52_v27, %v52_v27 }
  0x4a   :  { %v55_v30 = vadd.f32 %v54_v28, %v53_v29 }
  0x4c   :  { %57 = vst.msk [vmem:[#allocation2] sm:$0xff] %vm40_vm0, %v55_v30 }
  0x53   :  { %v61_v31 = vld [vmem:[#allocation2] sm:$0xff] }
  0x54   :  { %v62_v32 = vsel %vm40_vm0, %v61_v31, 0.0 }
  0x55   :  { %63 = vadd.xlane.f32.xlu0 %v62_v32 }
  0xde   :  { %v64_v33 = vpop.xlane.xlu0 %63 }
  0xdf   :  { %v65_v34 = vrot.slane %v64_v33, 4 }
  0xe1   :  { %v66_v35 = vadd.f32 %v65_v34, %v64_v33 }
  0xe3   :  { %v67_v36 = vrot.slane %v66_v35, 2 }
  0xe5   :  { %v68_v37 = vadd.f32 %v67_v36, %v66_v35 }
  0xe7   :  { %v69_v38 = vrot.slane %v68_v37, 1 }
  0xe9   :  { %v70_v39 = vadd.f32 %v69_v38, %v68_v37 }
  0xeb   :  { %144 = vpush %v70_v39 }
 0x11c   :  { %s145_s19 = spop %144 }
 0x11d   :  { %s72_s20 = smul.f32 0.0078125, %s145_s19 }
 0x11f   :  { %v73_v40 = vstv %s72_s20 }
 0x120   :  { %75 = vst.msk [vmem:[#allocation8] sm:$0x1] %vm74_vm11, %v73_v40 }
 0x121   :  { %209 = shalt.err (!%p206_p0)
}
 0x122   :  { %85 = dma.vmem_to_hbm [thread:$0]  %s83_s1, 16, %s257_s2, [#allocation5]  }
 0x123   :  { %222 = dma.done.wait [#allocation5], 16  }
 0x124   :  { %223 = vsyncadd [#allocation5], 4294967280 }
 0x125   :  { %89 = vsyncpa [#allocation4], 1 }
 0x126   :  { %90 = vsyncpa [#allocation7], 1 }
 0x127   :  { %91 = vsyncpa [#allocation5], 1 }

</bundles_post_ra>
